<compile_context>
chip_gen: v7x
topology: tpu7x:2x2x1
jax: 0.10.0
libtpu: 0.0.40
codegen_flags: <defaults>
</compile_context>

<pallas_src>
import functools

import jax
import jax.numpy as jnp
from jax.experimental import pallas as pl
from jax.experimental.pallas import tpu as pltpu

EPS = 1e-5  # nn.InstanceNorm2d default eps, affine=False


def _downsample_kernel(t_ref, w_ref, o_ref, *, hw, w_out, c_in):
    # t_ref: (1, 6*Cin, HW_half) bf16  phase-plane taps for one sample
    #        row k = pa*3*Cin + kw*Cin + cin ; col s = r*W_out + j, r in [0, H_out]
    # w_ref: (Cout, 9*Cin)       bf16  cols [0:6Cin) -> kh in {0,1}; [6Cin:9Cin) -> kh == 2
    # o_ref: (1, Cout, HW)       f32   HW on the lane axis
    k6 = 6 * c_in
    k3 = 3 * c_in
    taps = t_ref[0]                     # (6*Cin, HW_half) bf16
    w = w_ref[...]                      # (Cout, 9*Cin)    bf16

    # 3x3 stride-2 conv as two MXU matmuls with f32 accumulation:
    #   kh in {0,1}: all six phase planes at spatial offset 0
    #   kh == 2    : even-parity planes (leading 3*Cin rows) shifted by W_out
    conv = jnp.dot(w[:, :k6], taps[:, :hw],
                   preferred_element_type=jnp.float32)                 # (Cout, HW)
    conv = conv + jnp.dot(w[:, k6:], taps[:k3, w_out:w_out + hw],
                          preferred_element_type=jnp.float32)

    # InstanceNorm2d (affine=False): fused single-pass sum / sum-of-squares
    # over the spatial (lane) axis, biased variance, eps inside the rsqrt.
    inv_hw = 1.0 / hw
    mean = jnp.sum(conv, axis=1, keepdims=True) * inv_hw               # (Cout, 1)
    ex2 = jnp.sum(conv * conv, axis=1, keepdims=True) * inv_hw
    rstd = jax.lax.rsqrt(ex2 - mean * mean + EPS)

    # ReLU + store (f32, matches nn.InstanceNorm2d semantics).
    o_ref[0] = jnp.maximum((conv - mean) * rstd, 0.0).astype(o_ref.dtype)


def downsample_forward(x_nchw, weight_oihw):
    """x_nchw: (N, Cin, H, W); weight_oihw: (Cout, Cin, 3, 3).
    Returns (N, Cout, H_out, W_out) matching the PyTorch module."""
    N, Cin, H, W = x_nchw.shape
    Cout = weight_oihw.shape[0]
    H_out = (H - 1) // 2 + 1            # stride=2, pad=1, k=3
    W_out = (W - 1) // 2 + 1
    HW = H_out * W_out
    HW_half = (H_out + 1) * W_out       # phase-plane rows (one extra output row)
    K6 = 6 * Cin
    K9 = 9 * Cin

    # --- taps (bf16, ~0.75x input bytes in HBM), built straight from NCHW ---
    #     taps[n, pa*3*Cin + kw*Cin + c, r*W_out + j] = x_padded[n, c, 2r+pa, 2j+kw]
    x = x_nchw.astype(jnp.bfloat16)
    Hp, Wp = 2 * H_out + 2, 2 * W_out + 2
    xp = jnp.pad(x, ((0, 0), (0, 0), (1, Hp - H - 1), (1, Wp - W - 1)))
    planes = []
    for pa in range(2):                 # input-row parity (kh % 2)
        for kw in range(3):             # column tap
            planes.append(xp[:, :, pa::2, kw::2][:, :, :H_out + 1, :W_out])
    taps = jnp.stack(planes, axis=1)                   # (N, 6, Cin, H_out+1, W_out)
    taps = taps.reshape(N, K6, HW_half)

    # --- weights: single merged (Cout, 9*Cin) bf16 operand ---
    #     cols [0:6Cin)   = kh*3*Cin + kw*Cin + cin  for kh in {0, 1}
    #     cols [6Cin:9Cin) = kw*Cin + cin            for kh == 2
    w = weight_oihw
    wa = jnp.transpose(w[:, :, 0:2, :], (0, 2, 3, 1)).reshape(Cout, K6)
    wb = jnp.transpose(w[:, :, 2, :], (0, 2, 1)).reshape(Cout, 3 * Cin)
    wm = jnp.concatenate([wa, wb], axis=1).astype(jnp.bfloat16)

    # --- Pallas kernel: 2 matmuls + fused instance-norm + relu, grid over N ---
    out = pl.pallas_call(
        functools.partial(_downsample_kernel, hw=HW, w_out=W_out, c_in=Cin),
        out_shape=jax.ShapeDtypeStruct((N, Cout, HW), jnp.float32),
        grid_spec=pltpu.PrefetchScalarGridSpec(
            num_scalar_prefetch=0,
            grid=(N,),
            in_specs=[
                pl.BlockSpec((1, K6, HW_half), lambda n: (n, 0, 0)),
                pl.BlockSpec((Cout, K9), lambda n: (0, 0)),
            ],
            out_specs=pl.BlockSpec((1, Cout, HW), lambda n: (n, 0, 0)),
        ),
        compiler_params=pltpu.CompilerParams(
            dimension_semantics=("parallel",),
            vmem_limit_bytes=64 * 1024 * 1024,
        ),
    )(taps, wm)

    # (N, Cout, HW) is already channel-major: plain reshape, no transpose/slice.
    return out.reshape(N, Cout, H_out, W_out)


def _reference_forward(x_nchw, weight_oihw):
    """Pure-JAX f32 reference of the PyTorch forward (for self-check)."""
    conv = jax.lax.conv_general_dilated(
        x_nchw.astype(jnp.float32), weight_oihw.astype(jnp.float32),
        window_strides=(2, 2), padding=((1, 1), (1, 1)),
        dimension_numbers=("NCHW", "OIHW", "NCHW"),
        precision=jax.lax.Precision.HIGHEST)
    mean = jnp.mean(conv, axis=(2, 3), keepdims=True)
    var = jnp.mean((conv - mean) ** 2, axis=(2, 3), keepdims=True)
    return jnp.maximum((conv - mean) * jax.lax.rsqrt(var + EPS), 0.0)


if __name__ == "__main__":
    key = jax.random.PRNGKey(0)
    kx, kw = jax.random.split(key)

    N, C_in, C_out, H, W = 2, 4, 8, 16, 16
    x = jax.random.normal(kx, (N, C_in, H, W), dtype=jnp.float32)
    # Deterministic synthetic conv weight (Cout, Cin, 3, 3), no bias (bias=False).
    weight = 0.1 * jax.random.normal(kw, (C_out, C_in, 3, 3), dtype=jnp.float32)

    out = jax.block_until_ready(jax.jit(downsample_forward)(x, weight))
    assert out.shape == (N, C_out, H // 2, W // 2), out.shape

    # Kernel-math check: reference fed the same bf16-quantized operands
    # (only f32 accumulation order differs from the MXU path).
    xq = x.astype(jnp.bfloat16).astype(jnp.float32)
    wq = weight.astype(jnp.bfloat16).astype(jnp.float32)
    ref_q = _reference_forward(xq, wq)
    assert jnp.allclose(out, ref_q, atol=2e-4, rtol=2e-4), \
        float(jnp.max(jnp.abs(out - ref_q)))

    # Module-semantics check vs the f32 PyTorch forward (bf16 operand drift only).
    ref = _reference_forward(x, weight)
    assert jnp.allclose(out, ref, atol=3e-2, rtol=3e-2), \
        float(jnp.max(jnp.abs(out - ref)))

    print("KERNEL_OK")
</pallas_src>

<mosaic_0001>
module attributes {stable_mosaic.version = 11 : i64} {
  func.func @_downsample_kernel(%arg0: i32, %arg1: memref<1x24x72xbf16, #tpu.memory_space<vmem>>, %arg2: memref<8x36xbf16, #tpu.memory_space<vmem>>, %arg3: memref<1x8x64xf32, #tpu.memory_space<vmem>>) attributes {dimension_semantics = [#tpu.dimension_semantics<parallel>], iteration_bounds = array<i64: 2>, scalar_prefetch = 0 : i64, scratch_operands = 0 : i64, tpu.core_type = #tpu.core_type<tc>, window_params = [{transform_indices = @transform_0, window_bounds = array<i64: 1, 24, 72>}, {pipeline_mode = #tpu.pipeline_mode<synchronous>, transform_indices = @transform_1, window_bounds = array<i64: 8, 36>}, {transform_indices = @transform_2, window_bounds = array<i64: 1, 8, 64>}]} {
    %c0 = arith.constant 0 : index
    %c0_0 = arith.constant 0 : index
    %c0_1 = arith.constant 0 : index
    %0 = vector.load %arg1[%c0, %c0_0, %c0_1] : memref<1x24x72xbf16, #tpu.memory_space<vmem>>, vector<1x24x72xbf16>
    %1 = vector.shape_cast %0 : vector<1x24x72xbf16> to vector<24x72xbf16>
    %c0_2 = arith.constant 0 : index
    %c0_3 = arith.constant 0 : index
    %2 = vector.load %arg2[%c0_2, %c0_3] : memref<8x36xbf16, #tpu.memory_space<vmem>>, vector<8x36xbf16>
    %3 = vector.extract_strided_slice %2 {offsets = [0, 0], sizes = [8, 24], strides = [1, 1]} : vector<8x36xbf16> to vector<8x24xbf16>
    %4 = vector.extract_strided_slice %1 {offsets = [0, 0], sizes = [24, 64], strides = [1, 1]} : vector<24x72xbf16> to vector<24x64xbf16>
    %cst = arith.constant dense<0.000000e+00> : vector<8x64xf32>
    %5 = tpu.matmul %3, %4, %cst {dimension_numbers = #tpu.dot_dimension_numbers<[1], [0], [0], [1], [0, 0, 1, 1], [], []>} : vector<8x24xbf16>, vector<24x64xbf16>, vector<8x64xf32> -> vector<8x64xf32>
    %6 = vector.extract_strided_slice %2 {offsets = [0, 24], sizes = [8, 12], strides = [1, 1]} : vector<8x36xbf16> to vector<8x12xbf16>
    %7 = vector.extract_strided_slice %1 {offsets = [0, 8], sizes = [12, 64], strides = [1, 1]} : vector<24x72xbf16> to vector<12x64xbf16>
    %cst_4 = arith.constant dense<0.000000e+00> : vector<8x64xf32>
    %8 = tpu.matmul %6, %7, %cst_4 {dimension_numbers = #tpu.dot_dimension_numbers<[1], [0], [0], [1], [0, 0, 1, 1], [], []>} : vector<8x12xbf16>, vector<12x64xbf16>, vector<8x64xf32> -> vector<8x64xf32>
    %9 = arith.addf %5, %8 : vector<8x64xf32>
    %cst_5 = arith.constant dense<0.000000e+00> : vector<8xf32>
    %10 = vector.multi_reduction <add>, %9, %cst_5 [1] : vector<8x64xf32> to vector<8xf32>
    %11 = vector.shape_cast %10 : vector<8xf32> to vector<8x1xf32>
    %cst_6 = arith.constant 1.562500e-02 : f32
    %12 = vector.broadcast %cst_6 : f32 to vector<8x1xf32>
    %13 = arith.mulf %11, %12 : vector<8x1xf32>
    %14 = arith.mulf %9, %9 : vector<8x64xf32>
    %cst_7 = arith.constant dense<0.000000e+00> : vector<8xf32>
    %15 = vector.multi_reduction <add>, %14, %cst_7 [1] : vector<8x64xf32> to vector<8xf32>
    %16 = vector.shape_cast %15 : vector<8xf32> to vector<8x1xf32>
    %cst_8 = arith.constant 1.562500e-02 : f32
    %17 = vector.broadcast %cst_8 : f32 to vector<8x1xf32>
    %18 = arith.mulf %16, %17 : vector<8x1xf32>
    %19 = arith.mulf %13, %13 : vector<8x1xf32>
    %20 = arith.subf %18, %19 : vector<8x1xf32>
    %cst_9 = arith.constant 9.99999974E-6 : f32
    %21 = vector.broadcast %cst_9 : f32 to vector<8x1xf32>
    %22 = arith.addf %20, %21 : vector<8x1xf32>
    %23 = math.rsqrt %22 : vector<8x1xf32>
    %24 = vector.broadcast %13 : vector<8x1xf32> to vector<8x64xf32>
    %25 = arith.subf %9, %24 : vector<8x64xf32>
    %26 = vector.broadcast %23 : vector<8x1xf32> to vector<8x64xf32>
    %27 = arith.mulf %25, %26 : vector<8x64xf32>
    %cst_10 = arith.constant 0.000000e+00 : f32
    %28 = vector.broadcast %cst_10 : f32 to vector<8x64xf32>
    %29 = arith.maximumf %27, %28 : vector<8x64xf32>
    %c0_11 = arith.constant 0 : index
    %c0_12 = arith.constant 0 : index
    %c0_13 = arith.constant 0 : index
    %30 = vector.load %arg3[%c0_11, %c0_12, %c0_13] : memref<1x8x64xf32, #tpu.memory_space<vmem>>, vector<1x8x64xf32>
    %31 = vector.shape_cast %30 : vector<1x8x64xf32> to vector<8x64xf32>
    %32 = vector.shape_cast %29 : vector<8x64xf32> to vector<1x8x64xf32>
    tpu.vector_store %arg3[%c0_11, %c0_12, %c0_13], %32 {strides = array<i32>} : memref<1x8x64xf32, #tpu.memory_space<vmem>>, vector<1x8x64xf32>,
    return
  }
  func.func @transform_0(%arg0: i32) -> (i32, i32, i32) {
    %c0_i32 = arith.constant 0 : i32
    %c0_i32_0 = arith.constant 0 : i32
    %c0_i32_1 = arith.constant 0 : i32
    return %arg0, %c0_i32, %c0_i32_0 : i32, i32, i32
  }
  func.func @transform_1(%arg0: i32) -> (i32, i32) {
    %c0_i32 = arith.constant 0 : i32
    %c0_i32_0 = arith.constant 0 : i32
    %c0_i32_1 = arith.constant 0 : i32
    return %c0_i32, %c0_i32_0 : i32, i32
  }
  func.func @transform_2(%arg0: i32) -> (i32, i32, i32) {
    %c0_i32 = arith.constant 0 : i32
    %c0_i32_0 = arith.constant 0 : i32
    %c0_i32_1 = arith.constant 0 : i32
    return %arg0, %c0_i32, %c0_i32_0 : i32, i32, i32
  }
}

</mosaic_0001>

<bundles_post_ra>
// kernel: downsample_forward.1
= control target key start
LH: loop header
LB: loop body
LE: loop exit
PB: predicated region body
PF: predicated region fallthrough
CT: control target
= control target key end

     0   :  { %7 = vsyncpa [#allocation3], 0  ;;  %s866_s0 = inlined_call_operand.hbm [shape: bf16[2,24,72], index: 0, kind: input, shape index: {}]   ;;  %s867_s1 = inlined_call_operand.hbm [shape: bf16[8,36], index: 1, kind: input, shape index: {}]   ;;  %s868_s2 = inlined_call_operand.hbm [shape: f32[2,8,64], index: 2, kind: output, shape index: {}]  }
   0x1   :  { %9 = vsyncpa [#allocation3 + $0x1], 0 }
   0x2   :  { %10 = vsyncpa [#allocation6], 0 }
   0x3   :  { %11 = vsyncpa [#allocation4], 0 }
   0x4   :  { %13 = vsyncpa [#allocation4 + $0x1], 0  ;;  %s666_s9 = smov 0   ;;  %s668_s10 = smov 0  }
   0x5   :  { %s670_s11 = smov 0   ;;  %s672_s12 = smov 0  }
   0x6 LB: > { %s687_s13 = sadd.s32 4294967295, %s640_s12   ;;  %s404_s14 = sadd.s32 4294967294, %s640_s12   ;;  %s640_s12 = sphi %s672_s12, %s893_s12   ;;  %s636_s11 = sphi %s670_s11, %s892_s11   ;;  %s632_s10 = sphi %s668_s10, %s891_s10   ;;  %s628_s9 = sphi %s666_s9, %s890_s9  }
   0x7   : > { %s691_s15 = sadd.s32 1, %s640_s12   ;;  %s26_s16 = sadd.s32 1, %s636_s11 }
   0x8   : > { %s23_s17 = ssub.s32 %s640_s12, %s691_s15  ;;  %p33_p0 = scmp.ne.s32.totalorder %s636_s11, %s632_s10 }
   0x9   : > { %p24_p1 = scmp.eq.s32.totalorder %s23_s17, 0  ;;  %p34_p2 = scmp.eq.s32.totalorder %s640_s12, 0 }
   0xa   : > { %p39_p3 = scmp.ne.s32.totalorder %s632_s10, %s628_s9  ;;  %p869_p4 = scmp.eq.s32.totalorder %s687_s13, 0 }
   0xb   : > { %s703_s18 = scalar_select %p24_p1, %s636_s11, %s26_s16  }
   0xc   : > { %p705_p5 = por %p34_p2, %p33_p0  ;;  %p711_p6 = por %p869_p4, %p39_p3 }
   0xd   : > { %p84_p7 = scmp.eq.s32.totalorder %s687_s13, 1  ;;  %p90_p8 = scmp.eq.s32.totalorder %s404_s14, 1 }
   0xe   : > { %s875_s20 = scalar_select %p711_p6, 1, 0 }
   0xf   : > { %p405_p9 = scmp.ge.s32.totalorder %s640_s12, 1  ;;  %p97_p10 = scmp.lt.s32.totalorder %s640_s12, 3 }
  0x10   : > { %p718_p11 = por %p84_p7, %p33_p0  ;;  %p722_p12 = por %p90_p8, %p39_p3 }
  0x11   : > { %p726_p13 = pnand %p405_p9, %p97_p10  ;;  %s642_s24 = smov [#allocation5]  }
  0x12   : > { %s876_s21 = scalar_select %p718_p11, 1, 0 }
  0x13   : > { %s877_s22 = scalar_select %p722_p12, 1, 0 }
  0x14   : > { %s878_s23 = scalar_select %p726_p13, 1, 0 }
  0x15   : > { %p452_p2 = pneg %p726_p13  ;;  %s110_s25 = sshll.u32 %s642_s24, 4  ;;  %s111_s25 = int_to_ptr.vmem [resolvable:$true] %s110_s25 }
  0x16   : > { %p465_p4 = scmp.lt.s32.totalorder %s640_s12, 2  ;;  %p879_p0 = scmp.eq.s32.totalorder %s687_s13, 0 }
  0x17   : > { %s121_s27 = sand.u32 1, %s636_s11   ;;  %s512_s4 = scalar_lea.hbm %s867_s1, 64 }
  0x18   : > { %p736_p7 = pnand %p452_p2, %p879_p0  ;;  %p743_p3 = pnand %p465_p4, %p705_p5 }
  0x19   : > { %s441_s29 = smul.u32 12, %s121_s27  ;;  %p513_p8 = scmp.ne.s32.totalorder %s867_s1, %s512_s4 }
  0x1a   : > { %s881_s28 = scalar_select %p743_p3, 1, 0 }
  0x1b   : > { %p514_p9 = pneg %p736_p7  ;;  %p519_p4 = scmp.lt.u32.totalorder %s512_s4, %s867_s1 }
  0x1d   : > { %p515_p10 = pnand %p514_p9, %p513_p8 }
  0x1f   : > { %p516_p2 = pneg %p515_p10 }
  0x21   : > { %p521_p5 = pnand %p519_p4, %p516_p2 }
  0x23   : > { %524 = shalt.err (!%p521_p5)
}
  0x24   : > { %s525_s14 = scalar_lea.vmem %s111_s25, 64  ;;  %p533_p11 = scmp.lt.s32.totalorder %s111_s25, %s111_s25 }
  0x25   : > { %p526_p0 = scmp.ne.s32.totalorder %s111_s25, %s525_s14  ;;  %p534_p6 = scmp.lt.s32.totalorder %s525_s14, %s525_s14 }
  0x27   : > { %p528_p1 = pnand %p526_p0, %p514_p9  ;;  %p535_p13 = por %p534_p6, %p533_p11 }
  0x29   : > { %p529_p12 = pneg %p528_p1 }
  0x2b   : > { %p536_p3 = pnand %p535_p13, %p529_p12 }
  0x2d   : > { %539 = shalt.err (!%p536_p3)
}
  0x2e   : > { %455 = dma.hbm_to_vmem [thread:$0]  (!%p736_p7), %s867_s1, 64, %s111_s25, [#allocation6]  }
  0x2f   : > { %s442_s19 = smul.u32 192, %s640_s12  ;;  %s125_s24 = scalar_lea.vmem [#allocation2], %s441_s29 }
  0x30   : > { %s132_s30 = sshll.u32 %s125_s24, 4  ;;  %s771_s26 = scalar_lea.sflag [#allocation3], %s121_s27  ;;  %s764_s30 = int_to_ptr.vmem [resolvable:$true] %s132_s30 }
  0x31   : > { %s769_s5 = scalar_lea.hbm %s866_s0, %s442_s19  ;;  %p882_p11 = scmp.ne.s32.totalorder %s881_s28, 0 }
  0x32   : > { %s540_s6 = scalar_lea.hbm %s769_s5, 192  ;;  %s545_s7 = scalar_lea.hbm %s866_s0, 384 }
  0x33   : > { %p541_p6 = scmp.ne.s32.totalorder %s769_s5, %s540_s6  ;;  %p542_p12 = pneg %p882_p11 }
  0x34   : > { %p546_p7 = scmp.lt.u32.totalorder %s769_s5, %s866_s0  ;;  %p547_p3 = scmp.lt.u32.totalorder %s545_s7, %s540_s6 }
  0x35   : > { %p543_p13 = pnand %p542_p12, %p541_p6  ;;  %p549_p9 = scmp.lt.u32.totalorder %s540_s6, %s769_s5 }
  0x36   : > { %p548_p8 = por %p547_p3, %p546_p7 }
  0x37   : > { %p544_p1 = pneg %p543_p13 }
  0x38   : > { %p550_p10 = por %p549_p9, %p548_p8 }
  0x3a   : > { %p551_p2 = pnand %p550_p10, %p544_p1 }
  0x3c   : > { %554 = shalt.err (!%p551_p2)
}
  0x3d   : > { %s555_s27 = scalar_lea.vmem %s764_s30, 192  ;;  %s643_s16 = smov [#allocation2]  }
  0x3e   : > { %p556_p4 = scmp.ne.s32.totalorder %s764_s30, %s555_s27  ;;  %s560_s17 = sshll.u32 %s643_s16, 4  ;;  %s561_s17 = int_to_ptr.vmem [resolvable:$false] %s560_s17 }
  0x3f   : > { %s562_s19 = scalar_lea.vmem %s561_s17, 384  ;;  %p563_p6 = scmp.lt.s32.totalorder %s764_s30, %s561_s17 }
  0x40   : > { %p558_p5 = pnand %p556_p4, %p542_p12  ;;  %p564_p13 = scmp.lt.s32.totalorder %s562_s19, %s555_s27 }
  0x42   : > { %p559_p0 = pneg %p558_p5  ;;  %p565_p7 = por %p564_p13, %p563_p6 }
  0x44   : > { %p566_p3 = pnand %p565_p7, %p559_p0 }
  0x46   : > { %569 = shalt.err (!%p566_p3)
}
  0x47   : > { %s644_s24 = smov 64   ;;  %s645_s3 = smov 4  }
  0x48   : > { %459 = dma.hbm_to_vmem [thread:$0]  (!%p882_p11), %s769_s5, 192, %s764_s30, %s771_s26, %s644_s24, %s644_s24, %s645_s3  }
  0x49   : > { %p883_p12 = scmp.ne.s32.totalorder %s878_s23, 0 }
  0x4a   : > { %s802_s4 = sand.u32 (!%p883_p12), 1, %s632_s10   ;;  %p884_p1 = scmp.ne.s32.totalorder (!%p883_p12), %s875_s20, 0 }
  0x4b   : > { %144 = sbr.rel (%p883_p12) target bundleno = 604 (0x25c), region = 28  ;;  %s147_s25 = scalar_lea.sflag (!%p883_p12), [#allocation3], %s802_s4 }
  0x4c   : > { %s443_s6 = smul.u32 (!%p883_p12), 12, %s802_s4 }
  0x4e   : > { %s150_s29 = scalar_lea.vmem (!%p883_p12), [#allocation2], %s443_s6 }
  0x52   : > { %615 = dma.done.wait (%p884_p1), %s147_s25, 192  }
  0x53   : > { %617 = vsyncadd (%p884_p1), %s147_s25, 4294967104  ;;  %p885_p8 = scmp.eq.s32.totalorder %s687_s13, 0 }
  0x55   : > { %619 = dma.done.wait (%p885_p8), [#allocation6], 64   ;;  %p886_p11 = pmov %p885_p8 }
  0x56   : > { %v646_v0 = vmov 0.0   ;;  %vm647_vm0 = vmmov 0   ;;  %v507_v1 = vld [vmem:[%s150_s29] sm:$0xff]   ;;  %vm248_vm1 = vcmask 1043456   ;;  %v179_v2 = vld [vmem:[#allocation5] sm:$0xf] }
  0x57   : > { %621 = vsyncadd (%p886_p11), [#allocation6], 4294967232  ;;  %432 = vmatprep.subr.bf16.mxu0 %v646_v0  ;;  %426 = vmatprep.subr.bf16.mxu1 %v646_v0  ;;  %v509_v3 = vld [vmem:[%s150_s29 + $0x8] ss:$0 sps:$4 sm:$0xff]   ;;  %s648_s23 = smov 120   ;;  %v412_v4 = vcombine.low %v179_v2, %v179_v2  ;;  %s649_s20 = smov 104  }
  0x58   : > { %436 = vmatprep.mubr.msk.bf16.mxu0 %vm647_vm0, %v646_v0  ;;  %428 = vmatprep.mubr.msk.bf16.mxu1 %vm647_vm0, %v646_v0  ;;  %v250_v5 = vsel %vm248_vm1, %v509_v3, 0  ;;  %vm244_vm2 = vcmask 195584   ;;  %vm196_vm3 = vcmask 1045504   ;;  %vm192_vm4 = vcmask 97280   ;;  %s411_s28 = sshll.u32 %s802_s4, 3  ;;  %s418_s30 = sshll.u32 %s687_s13, 7 }
  0x59   : > { %190 = vrot.lane.b32.xlu0 %v507_v1, %s648_s23  ;;  %433 = vmatpush3.bf16.msra.mxu0 %v507_v1  ;;  %vm292_vm5 = vcmask 523264   ;;  %s174_s5 = scalar_lea.vmem [#allocation7], %s411_s28  ;;  %s821_s14 = scalar_lea.hbm %s868_s2, %s418_s30 }
  0x5a   : > { %434 = vmatprep.subr.bf16.mxu0 %v646_v0  ;;  %s324_s26 = sshll.u32 %s174_s5, 4  ;;  %s311_s27 = scalar_lea.sflag [#allocation4], %s802_s4  ;;  %s823_s26 = int_to_ptr.vmem [resolvable:$true] %s324_s26 }
  0x5b   : > { %s570_s16 = scalar_lea.vmem %s823_s26, 128  ;;  %p887_p10 = scmp.ne.s32.totalorder %s876_s21, 0 }
  0x5c   : > { %p571_p9 = scmp.ne.s32.totalorder %s823_s26, %s570_s16  ;;  %s650_s13 = smov [#allocation7]  }
  0x5d   : > { %183 = vrot.lane.b32.xlu0 %v412_v4, %s649_s20  ;;  %435 = vmatpush3.bf16.msra.mxu0 %v250_v5  ;;  %s574_s17 = sshll.u32 %s650_s13, 4  ;;  %s575_s17 = int_to_ptr.vmem [resolvable:$false] %s574_s17 }
  0x5e   : > { %p572_p2 = pnand %p571_p9, %p887_p10  ;;  %s576_s19 = scalar_lea.vmem %s575_s17, 256 }
  0x5f   : > { %p577_p5 = scmp.lt.s32.totalorder %s823_s26, %s575_s17  ;;  %p578_p0 = scmp.lt.s32.totalorder %s576_s19, %s570_s16 }
  0x60   : > { %437 = vmatmul.mubr.msk.bf16.vlgmr.msra.gmra.mrb[0].mxu0 %vm244_vm2, %v179_v2  ;;  %p573_p4 = pneg %p572_p2 }
  0x61   : > { %p579_p6 = por %p578_p0, %p577_p5 }
  0x63   : > { %p580_p13 = pnand %p579_p6, %p573_p4 }
  0xcb   : > { %v191_v6 = vpop.permute.xlu0 %190 }
  0xcc   : > { %v198_v7 = vsel %vm196_vm3, %v191_v6, 0 }
  0xcd   : > { %427 = vmatpush3.bf16.msra.mxu1 %v198_v7 }
  0xcf   : > { %v184_v8 = vpop.permute.xlu0 %183 }
  0xd0   : > { %429 = vmatmul.mubr.msk.bf16.vlgmr.msra.gmra.mrb[0].mxu1 %vm192_vm4, %v184_v8 }
 0x133   : > { %v286_v9 = vpop.f32.mrb[0].mxu0 }
 0x134   : > { %v438_v10 = vpop.f32.mrb[1].mxu0 }
 0x135   : > { %v289_v11 = vpop.f32.mrb[2].mxu0 }
 0x136   : > { %v439_v12 = vpop.f32.mrb[3].mxu0 }
 0x1a3   : > { %v234_v13 = vpop.f32.mrb[0].mxu1 }
 0x1a4   : > { %v287_v14 = vadd.f32 %v286_v9, %v234_v13  ;;  %v430_v15 = vpop.f32.mrb[1].mxu1 }
 0x1a5   : > { %v237_v16 = vpop.f32.mrb[2].mxu1 }
 0x1a6   : > { %v431_v17 = vpop.f32.mrb[3].mxu1  ;;  %v293_v18 = vsel %vm292_vm5, %v287_v14, 0.0  ;;  %v297_v19 = vmul.f32 %v287_v14, %v287_v14 }
 0x1a7   : > { %294 = vadd.xlane.f32.xlu1 %v293_v18 }
 0x1a8   : > { %v298_v20 = vsel %vm292_vm5, %v297_v19, 0.0 }
 0x1ab   : > { %299 = vadd.xlane.f32.xlu1 %v298_v20 }
 0x234   : > { %v295_v21 = vpop.xlane.xlu1 %294 }
 0x235   : > { %v296_v22 = vmul.f32 0.015625, %v295_v21 }
 0x237   : > { %v302_v24 = vmul.f32 %v296_v22, %v296_v22  ;;  %v306_v28 = vsub.f32 %v287_v14, %v296_v22 }
 0x238   : > { %v300_v23 = vpop.xlane.xlu1 %299 }
 0x239   : > { %v301_v25 = vmul.f32 0.015625, %v300_v23 }
 0x23b   : > { %v303_v26 = vsub.f32 %v301_v25, %v302_v24 }
 0x23d   : > { %v304_v27 = vadd.f32 1e-05, %v303_v26 }
 0x23f   : > { %510 = vrsqrt.f32 %v304_v27 }
 0x249   : > { %v511_v29 = vpop.eup %510 }
 0x24a   : > { %v307_v30 = vmul.f32 %v511_v29, %v306_v28 }
 0x24c   : > { %v308_v31 = vmax.f32 %v307_v30, 0.0 }
 0x24e   : > { %309 = vst.msk [vmem:[%s174_s5] sm:$0xff] %vm292_vm5, %v308_v31 }
 0x24f   : > { %583 = shalt.err (!%p580_p13)
}
 0x250   : > { %s584_s24 = scalar_lea.hbm %s821_s14, 128  ;;  %s588_s6 = scalar_lea.hbm %s868_s2, 256 }
 0x251   : > { %p585_p7 = scmp.ne.s32.totalorder %s821_s14, %s584_s24  ;;  %p589_p1 = scmp.lt.u32.totalorder %s821_s14, %s868_s2 }
 0x252   : > { %p590_p8 = scmp.lt.u32.totalorder %s588_s6, %s584_s24  ;;  %p592_p9 = scmp.lt.u32.totalorder %s584_s24, %s821_s14 }
 0x253   : > { %p586_p3 = pnand %p585_p7, %p887_p10 }
 0x254   : > { %p591_p11 = por %p590_p8, %p589_p1 }
 0x255   : > { %p587_p12 = pneg %p586_p3 }
 0x256   : > { %p593_p2 = por %p592_p9, %p591_p11 }
 0x258   : > { %p594_p4 = pnand %p593_p2, %p587_p12 }
 0x25a   : > { %597 = shalt.err (!%p594_p4)
}
 0x25b   : > { %450 = dma.vmem_to_hbm [thread:$0]  (%p887_p10), %s823_s26, 128, %s821_s14, %s311_s27  }
 0x25c PF: > { %s336_s23 = sand.u32 1, %s628_s9   ;;  %p888_p5 = scmp.ne.s32.totalorder %s877_s22, 0 }
 0x25d   : > { %p889_p0 = scmp.ge.s32.totalorder %s640_s12, 2  ;;  %s337_s20 = scalar_lea.sflag [#allocation4], %s336_s23 }
 0x25f   : > { %p461_p6 = pnand %p889_p0, %p888_p5 }
 0x261   : > { %623 = dma.done.wait (!%p461_p6), %s337_s20, 128  }
 0x262   : > { %625 = vsyncadd (!%p461_p6), %s337_s20, 4294967168  ;;  %p16_p13 = scmp.ge.s32.totalorder %s691_s15, 4   ;;  %s890_s9 = smov %s632_s10 }
 0x263   : > { %s891_s10 = smov %s636_s11  ;;  %s892_s11 = smov %s703_s18 }
 0x264   : > { %s893_s12 = smov %s691_s15  ;;  %18 = sbr.rel (!%p16_p13) target bundleno = 6 (0x6), region = 77 }
 0x26b   :  { %342 = vsyncpa [#allocation3], 1 }
 0x26c   :  { %344 = vsyncpa [#allocation3 + $0x1], 1 }
 0x26d   :  { %345 = vsyncpa [#allocation6], 1 }
 0x26e   :  { %346 = vsyncpa [#allocation4], 1 }
 0x26f   :  { %348 = vsyncpa [#allocation4 + $0x1], 1 }

</bundles_post_ra>
